<compile_context>
chip_gen: v5e
topology: v5e:2x2
jax: 0.10.0
libtpu: 0.0.40
codegen_flags: <defaults>
</compile_context>

<pallas_src>
import functools

import jax
import jax.numpy as jnp
from jax.experimental import pallas as pl
from jax.experimental.pallas import tpu as pltpu


def _round_up(x, m):
    return ((x + m - 1) // m) * m


# ----------------------------------------------------------------------------
# Activations (ACTIVATIONS dict of the reference module).
# softmax / logsoftmax use dim=1, which for (N, D) inputs equals axis=-1.
# `d_logical` is the un-padded feature width of this layer; padded lanes are
# masked to -inf before softmax-style reductions and zeroed afterwards when
# the layer is not last (so the next matmul never sees -inf).
# ----------------------------------------------------------------------------
def _kernel_activation(y, act, d_logical, is_last):
    if act in (None, "none"):
        return y
    if act == "relu":
        return jnp.maximum(y, 0.0)
    if act == "tanh":
        return jnp.tanh(y)
    if act == "sigmoid":
        return jax.nn.sigmoid(y)
    if act == "lrelu":
        # nn.LeakyReLU default negative_slope = 0.01
        return jnp.where(y >= 0.0, y, 0.01 * y)
    if act in ("softmax", "logsoftmax"):
        d_pad = y.shape[-1]
        has_pad = d_pad != d_logical
        if has_pad:
            lane = jax.lax.broadcasted_iota(jnp.int32, y.shape, y.ndim - 1)
            valid = lane < d_logical
            y = jnp.where(valid, y, -jnp.inf)
        m = jnp.max(y, axis=-1, keepdims=True)
        z = y - m
        e = jnp.exp(z)
        s = jnp.sum(e, axis=-1, keepdims=True)
        if act == "softmax":
            out = e / s                      # exact f32 divide: rows sum to 1
        else:
            out = z - jnp.log(s)
        if has_pad and not is_last:
            # logsoftmax leaves -inf in padded lanes; zero them so the next
            # matmul (against zero-padded weight rows) cannot produce NaN.
            out = jnp.where(valid, out, 0.0)
        return out
    raise ValueError(f"unknown activation: {act}")


# ----------------------------------------------------------------------------
# Fused MLP kernel: h = x; for each layer: h = act(h @ W_l + b_l); o = h
# refs = (x_ref, W1_ref, b1_ref, W2_ref, b2_ref, ..., o_ref)
# Weights are bf16 (pre-cast once at prep time), biases f32. Activations stay
# in bf16 between layers; MXU accumulation and pointwise math are f32.
# ----------------------------------------------------------------------------
def _mlp_kernel(*refs, nonlins, logical_dims):
    x_ref = refs[0]
    o_ref = refs[-1]
    p_refs = refs[1:-1]
    n_layers = len(nonlins)

    h = x_ref[...]                                    # (tm, d_in) bf16
    for li, act in enumerate(nonlins):
        w = p_refs[2 * li][...]                       # (K_pad, D_pad) bf16
        b = p_refs[2 * li + 1][...]                   # (1, D_pad) f32
        y = jnp.dot(h, w, preferred_element_type=jnp.float32) + b
        is_last = li == n_layers - 1
        y = _kernel_activation(y, act, logical_dims[li], is_last)
        if is_last:
            o_ref[...] = y.astype(o_ref.dtype)
        else:
            h = y.astype(jnp.bfloat16)


# ----------------------------------------------------------------------------
# One-time parameter prep: pad hidden dims to multiples of 128 (lane-dense
# matmuls), cast weights to bf16. The LAST layer keeps its logical output
# width so the kernel writes the exact (N, D_out) result (no slice afterwards).
# ----------------------------------------------------------------------------
def prepare_mlp_params(params):
    n_layers = len(params)
    dims = [w.shape[1] for (w, _) in params]
    prepped = []
    prev_pad = params[0][0].shape[0]          # input feature dim, not padded
    for li, ((w, b), d) in enumerate(zip(params, dims)):
        is_last = li == n_layers - 1
        dp = d if is_last else _round_up(d, 128)
        di = w.shape[0]
        w_p = jnp.zeros((prev_pad, dp), jnp.bfloat16).at[:di, :d].set(
            w.astype(jnp.bfloat16))
        b_p = jnp.zeros((1, dp), jnp.float32).at[0, :d].set(b)
        prepped.append((w_p, b_p))
        prev_pad = dp
    return prepped, dims


# ----------------------------------------------------------------------------
# Forward wrapper: single pallas_call, row-tiled grid, weights resident.
# ----------------------------------------------------------------------------
def mlp_forward(x, prepped, nonlins, dims):
    assert len(prepped) == len(nonlins) == len(dims)
    n, d_in = x.shape
    d_out = dims[-1]

    # Row tile: big batches -> 512-row tiles (HBM-roofline friendly, grid
    # shards across TensorCores on v7x); small batches -> one block.
    tm = min(512, _round_up(n, 8))
    n_pad = _round_up(n, tm)

    x_b = x.astype(jnp.bfloat16)              # halves input DMA; no f32 pad
    if n_pad != n:
        x_b = jnp.zeros((n_pad, d_in), jnp.bfloat16).at[:n].set(x_b)

    in_specs = [pl.BlockSpec((tm, d_in), lambda i: (i, 0))]
    flat_params = []
    for w_p, b_p in prepped:
        kp, dp = w_p.shape
        in_specs.append(pl.BlockSpec((kp, dp), lambda i: (0, 0)))
        in_specs.append(pl.BlockSpec((1, dp), lambda i: (0, 0)))
        flat_params += [w_p, b_p]

    kernel = functools.partial(
        _mlp_kernel, nonlins=tuple(nonlins), logical_dims=tuple(dims))

    out = pl.pallas_call(
        kernel,
        out_shape=jax.ShapeDtypeStruct((n_pad, d_out), jnp.float32),
        grid=(n_pad // tm,),
        in_specs=in_specs,
        out_specs=pl.BlockSpec((tm, d_out), lambda i: (i, 0)),
        compiler_params=pltpu.CompilerParams(
            dimension_semantics=("parallel",),
            vmem_limit_bytes=32 * 1024 * 1024,
        ),
    )(x_b, *flat_params)

    if n_pad != n:
        out = out[:n]
    return out


# ----------------------------------------------------------------------------
# Parameter init (roughly matches nn.Linear scale) and pure-JAX f32 reference.
# ----------------------------------------------------------------------------
def init_mlp_params(key, in_dim, dims):
    params = []
    cur = in_dim
    for d in dims:
        key, kw, kb = jax.random.split(key, 3)
        bound = 1.0 / jnp.sqrt(cur)
        w = jax.random.uniform(kw, (cur, d), jnp.float32, -bound, bound)
        b = jax.random.uniform(kb, (d,), jnp.float32, -bound, bound)
        params.append((w, b))
        cur = d
    return params


def _ref_activation(y, act):
    if act in (None, "none"):
        return y
    if act == "relu":
        return jnp.maximum(y, 0.0)
    if act == "tanh":
        return jnp.tanh(y)
    if act == "sigmoid":
        return jax.nn.sigmoid(y)
    if act == "lrelu":
        return jnp.where(y >= 0.0, y, 0.01 * y)
    if act == "softmax":
        return jax.nn.softmax(y, axis=-1)
    if act == "logsoftmax":
        return jax.nn.log_softmax(y, axis=-1)
    raise ValueError(act)


def mlp_reference(x, params, nonlins):
    out = x
    for (w, b), act in zip(params, nonlins):
        out = _ref_activation(out @ w + b[None, :], act)
    return out


if __name__ == "__main__":
    # MLP(in_dim=32, dims=[64, 128, 10], nonlins=['relu', 'tanh', 'softmax'])
    in_dim = 32
    dims = [64, 128, 10]
    nonlins = ["relu", "tanh", "softmax"]
    batch = 8

    key = jax.random.PRNGKey(0)
    key, kx = jax.random.split(key)
    x = jax.random.normal(kx, (batch, in_dim), dtype=jnp.float32)
    params = init_mlp_params(key, in_dim, dims)

    # One-time prep (padding + bf16 cast); forward does no parameter rewrites.
    prepped, dims_out = prepare_mlp_params(params)

    out = jax.block_until_ready(mlp_forward(x, prepped, nonlins, dims_out))
    ref = mlp_reference(x, params, nonlins)

    assert out.shape == (batch, dims[-1])
    # Tolerance accommodates bf16 MXU inputs / bf16 inter-layer activations
    # (f32 accumulation and f32 pointwise math).
    assert jnp.allclose(out, ref, atol=2e-2, rtol=2e-2), (
        float(jnp.max(jnp.abs(out - ref))))
    # Softmax rows sum to 1 (exact f32 normalization in the kernel).
    assert jnp.allclose(jnp.sum(out, axis=-1), 1.0, atol=1e-3)

    print("KERNEL_OK")
</pallas_src>

<mosaic_0001>
module attributes {stable_mosaic.version = 11 : i64} {
  func.func @_mlp_kernel(%arg0: i32, %arg1: memref<8x32xbf16, #tpu.memory_space<vmem>>, %arg2: memref<32x128xbf16, #tpu.memory_space<vmem>>, %arg3: memref<1x128xf32, #tpu.memory_space<vmem>>, %arg4: memref<128x128xbf16, #tpu.memory_space<vmem>>, %arg5: memref<1x128xf32, #tpu.memory_space<vmem>>, %arg6: memref<128x10xbf16, #tpu.memory_space<vmem>>, %arg7: memref<1x10xf32, #tpu.memory_space<vmem>>, %arg8: memref<8x10xf32, #tpu.memory_space<vmem>>) attributes {dimension_semantics = [#tpu.dimension_semantics<parallel>], iteration_bounds = array<i64: 1>, scalar_prefetch = 0 : i64, scratch_operands = 0 : i64, tpu.core_type = #tpu.core_type<tc>, window_params = [{transform_indices = @transform_0, window_bounds = array<i64: 8, 32>}, {pipeline_mode = #tpu.pipeline_mode<synchronous>, transform_indices = @transform_1, window_bounds = array<i64: 32, 128>}, {pipeline_mode = #tpu.pipeline_mode<synchronous>, transform_indices = @transform_2, window_bounds = array<i64: 1, 128>}, {pipeline_mode = #tpu.pipeline_mode<synchronous>, transform_indices = @transform_3, window_bounds = array<i64: 128, 128>}, {pipeline_mode = #tpu.pipeline_mode<synchronous>, transform_indices = @transform_4, window_bounds = array<i64: 1, 128>}, {pipeline_mode = #tpu.pipeline_mode<synchronous>, transform_indices = @transform_5, window_bounds = array<i64: 128, 10>}, {pipeline_mode = #tpu.pipeline_mode<synchronous>, transform_indices = @transform_6, window_bounds = array<i64: 1, 10>}, {transform_indices = @transform_7, window_bounds = array<i64: 8, 10>}]} {
    %c0 = arith.constant 0 : index
    %c0_0 = arith.constant 0 : index
    %0 = vector.load %arg1[%c0, %c0_0] : memref<8x32xbf16, #tpu.memory_space<vmem>>, vector<8x32xbf16>
    %c0_1 = arith.constant 0 : index
    %c0_2 = arith.constant 0 : index
    %1 = vector.load %arg2[%c0_1, %c0_2] : memref<32x128xbf16, #tpu.memory_space<vmem>>, vector<32x128xbf16>
    %c0_3 = arith.constant 0 : index
    %c0_4 = arith.constant 0 : index
    %2 = vector.load %arg3[%c0_3, %c0_4] : memref<1x128xf32, #tpu.memory_space<vmem>>, vector<1x128xf32>
    %cst = arith.constant dense<0.000000e+00> : vector<8x128xf32>
    %3 = tpu.matmul %0, %1, %cst {dimension_numbers = #tpu.dot_dimension_numbers<[1], [0], [0], [1], [0, 0, 1, 1], [], []>} : vector<8x32xbf16>, vector<32x128xbf16>, vector<8x128xf32> -> vector<8x128xf32>
    %4 = vector.broadcast %2 : vector<1x128xf32> to vector<8x128xf32>
    %5 = arith.addf %3, %4 : vector<8x128xf32>
    %cst_5 = arith.constant 0.000000e+00 : f32
    %6 = vector.broadcast %cst_5 : f32 to vector<8x128xf32>
    %7 = arith.maximumf %5, %6 : vector<8x128xf32>
    %8 = arith.truncf %7 : vector<8x128xf32> to vector<8x128xbf16>
    %c0_6 = arith.constant 0 : index
    %c0_7 = arith.constant 0 : index
    %9 = vector.load %arg4[%c0_6, %c0_7] : memref<128x128xbf16, #tpu.memory_space<vmem>>, vector<128x128xbf16>
    %c0_8 = arith.constant 0 : index
    %c0_9 = arith.constant 0 : index
    %10 = vector.load %arg5[%c0_8, %c0_9] : memref<1x128xf32, #tpu.memory_space<vmem>>, vector<1x128xf32>
    %cst_10 = arith.constant dense<0.000000e+00> : vector<8x128xf32>
    %11 = tpu.matmul %8, %9, %cst_10 {dimension_numbers = #tpu.dot_dimension_numbers<[1], [0], [0], [1], [0, 0, 1, 1], [], []>} : vector<8x128xbf16>, vector<128x128xbf16>, vector<8x128xf32> -> vector<8x128xf32>
    %12 = vector.broadcast %10 : vector<1x128xf32> to vector<8x128xf32>
    %13 = arith.addf %11, %12 : vector<8x128xf32>
    %14 = math.tanh %13 : vector<8x128xf32>
    %15 = arith.truncf %14 : vector<8x128xf32> to vector<8x128xbf16>
    %c0_11 = arith.constant 0 : index
    %c0_12 = arith.constant 0 : index
    %16 = vector.load %arg6[%c0_11, %c0_12] : memref<128x10xbf16, #tpu.memory_space<vmem>>, vector<128x10xbf16>
    %c0_13 = arith.constant 0 : index
    %c0_14 = arith.constant 0 : index
    %17 = vector.load %arg7[%c0_13, %c0_14] : memref<1x10xf32, #tpu.memory_space<vmem>>, vector<1x10xf32>
    %cst_15 = arith.constant dense<0.000000e+00> : vector<8x10xf32>
    %18 = tpu.matmul %15, %16, %cst_15 {dimension_numbers = #tpu.dot_dimension_numbers<[1], [0], [0], [1], [0, 0, 1, 1], [], []>} : vector<8x128xbf16>, vector<128x10xbf16>, vector<8x10xf32> -> vector<8x10xf32>
    %19 = vector.broadcast %17 : vector<1x10xf32> to vector<8x10xf32>
    %20 = arith.addf %18, %19 : vector<8x10xf32>
    %cst_16 = arith.constant dense<0xFF800000> : vector<8xf32>
    %21 = vector.multi_reduction <maximumf>, %20, %cst_16 [1] : vector<8x10xf32> to vector<8xf32>
    %22 = vector.shape_cast %21 : vector<8xf32> to vector<8x1xf32>
    %23 = vector.broadcast %22 : vector<8x1xf32> to vector<8x10xf32>
    %24 = arith.subf %20, %23 : vector<8x10xf32>
    %25 = math.exp %24 : vector<8x10xf32>
    %cst_17 = arith.constant dense<0.000000e+00> : vector<8xf32>
    %26 = vector.multi_reduction <add>, %25, %cst_17 [1] : vector<8x10xf32> to vector<8xf32>
    %27 = vector.shape_cast %26 : vector<8xf32> to vector<8x1xf32>
    %28 = vector.broadcast %27 : vector<8x1xf32> to vector<8x10xf32>
    %29 = arith.divf %25, %28 : vector<8x10xf32>
    %c0_18 = arith.constant 0 : index
    %c0_19 = arith.constant 0 : index
    %30 = vector.load %arg8[%c0_18, %c0_19] : memref<8x10xf32, #tpu.memory_space<vmem>>, vector<8x10xf32>
    tpu.vector_store %arg8[%c0_18, %c0_19], %29 {strides = array<i32>} : memref<8x10xf32, #tpu.memory_space<vmem>>, vector<8x10xf32>,
    return
  }
  func.func @transform_0(%arg0: i32) -> (i32, i32) {
    %c0_i32 = arith.constant 0 : i32
    %c0_i32_0 = arith.constant 0 : i32
    return %arg0, %c0_i32 : i32, i32
  }
  func.func @transform_1(%arg0: i32) -> (i32, i32) {
    %c0_i32 = arith.constant 0 : i32
    %c0_i32_0 = arith.constant 0 : i32
    %c0_i32_1 = arith.constant 0 : i32
    return %c0_i32, %c0_i32_0 : i32, i32
  }
  func.func @transform_2(%arg0: i32) -> (i32, i32) {
    %c0_i32 = arith.constant 0 : i32
    %c0_i32_0 = arith.constant 0 : i32
    %c0_i32_1 = arith.constant 0 : i32
    return %c0_i32, %c0_i32_0 : i32, i32
  }
  func.func @transform_3(%arg0: i32) -> (i32, i32) {
    %c0_i32 = arith.constant 0 : i32
    %c0_i32_0 = arith.constant 0 : i32
    %c0_i32_1 = arith.constant 0 : i32
    return %c0_i32, %c0_i32_0 : i32, i32
  }
  func.func @transform_4(%arg0: i32) -> (i32, i32) {
    %c0_i32 = arith.constant 0 : i32
    %c0_i32_0 = arith.constant 0 : i32
    %c0_i32_1 = arith.constant 0 : i32
    return %c0_i32, %c0_i32_0 : i32, i32
  }
  func.func @transform_5(%arg0: i32) -> (i32, i32) {
    %c0_i32 = arith.constant 0 : i32
    %c0_i32_0 = arith.constant 0 : i32
    %c0_i32_1 = arith.constant 0 : i32
    return %c0_i32, %c0_i32_0 : i32, i32
  }
  func.func @transform_6(%arg0: i32) -> (i32, i32) {
    %c0_i32 = arith.constant 0 : i32
    %c0_i32_0 = arith.constant 0 : i32
    %c0_i32_1 = arith.constant 0 : i32
    return %c0_i32, %c0_i32_0 : i32, i32
  }
  func.func @transform_7(%arg0: i32) -> (i32, i32) {
    %c0_i32 = arith.constant 0 : i32
    %c0_i32_0 = arith.constant 0 : i32
    return %arg0, %c0_i32 : i32, i32
  }
}

</mosaic_0001>

<bundles_post_ra>
// kernel: tpu_custom_call.1
= control target key start
LH: loop header
LB: loop body
LE: loop exit
PB: predicated region body
PF: predicated region fallthrough
CT: control target
= control target key end

     0   :  { %12 = vsyncpa [#allocation3], 0  ;;  %s560_s0 = inlined_call_operand.vmem [shape: bf16[8,32], index: 0, kind: input, shape index: {}]   ;;  %s561_s1 = inlined_call_operand.hbm [shape: bf16[32,128], index: 1, kind: input, shape index: {}]   ;;  %s562_s2 = inlined_call_operand.vmem [shape: f32[1,128], index: 2, kind: input, shape index: {}]   ;;  %s563_s3 = inlined_call_operand.vmem [shape: bf16[128,128], index: 3, kind: input, shape index: {}]   ;;  %s564_s4 = inlined_call_operand.vmem [shape: f32[1,128], index: 4, kind: input, shape index: {}]   ;;  %s565_s5 = inlined_call_operand.vmem [shape: bf16[128,10], index: 5, kind: input, shape index: {}]   ;;  %s566_s6 = inlined_call_operand.vmem [shape: f32[1,10], index: 6, kind: input, shape index: {}]   ;;  %s567_s7 = inlined_call_operand.hbm [shape: f32[8,10], index: 7, kind: output, shape index: {}]  }
   0x1   :  { %13 = vsyncpa [#allocation4], 0  ;;  %s20_s26 = sshll.u32 %s561_s1, 4  ;;  %s447_s27 = smov [#allocation2]   ;;  %s21_s26 = int_to_ptr.hbm [resolvable:$true] %s20_s26 }
   0x2   :  { %s22_s28 = sshll.u32 %s447_s27, 4  ;;  %s448_s29 = smov 64   ;;  %s23_s28 = int_to_ptr.vmem [resolvable:$true] %s22_s28 }
   0x3   :  { %s449_s30 = smov 4  }
   0x4   :  { %28 = dma.hbm_to_vmem [thread:$0]  %s21_s26, 256, %s23_s28, [#allocation3], %s448_s29, %s448_s29, %s449_s30  }
   0x5   :  { %443 = dma.done.wait [#allocation3], 256  }
   0x6   :  { %444 = vsyncadd [#allocation3], 4294967040  ;;  %v365_v0 = vld [vmem:[#allocation2 + $0x8] sm:$0xff]  ;;  %v373_v1 = vld [vmem:[%s563_s3 + $0x38] sm:$0xff]  ;;  %vm65_vm0 = vcmask 261120   ;;  %vm248_vm1 = vcmask 80896  }
   0x7   :  { %75 = vmatpush.bf16.msra.mxu0 %v365_v0  ;;  %v364_v2 = vld [vmem:[#allocation2] sm:$0xff]  ;;  %152 = vmatpush.bf16.msra.mxu1 %v373_v1  ;;  %v372_v3 = vld [vmem:[%s563_s3 + $0x30] sm:$0xff]  ;;  %v371_v5 = vld [vmem:[%s563_s3 + $0x28] sm:$0xff]  ;;  %s281_s20 = sshll.u32 %s567_s7, 4  ;;  %s282_s20 = int_to_ptr.hbm [resolvable:$true] %s281_s20 }
   0x8   :  { %v44_v4 = vld [vmem:[%s560_s0] sm:$0xf]  ;;  %v369_v7 = vld [vmem:[%s563_s3 + $0x18] sm:$0xff]  ;;  %v368_v8 = vld [vmem:[%s563_s3 + $0x10] sm:$0xff] }
   0x9   :  { %v370_v6 = vld [vmem:[%s563_s3 + $0x20] sm:$0xff]  ;;  %v367_v9 = vld [vmem:[%s563_s3 + $0x8] sm:$0xff]  ;;  %v381_v11 = vld [vmem:[%s565_s5 + $0x38] sm:$0xff] }
   0xa   :  { %v366_v10 = vld [vmem:[%s563_s3] sm:$0xff]  ;;  %235 = vmatpush.bf16.msra.mxu2 %v381_v11  ;;  %v380_v12 = vld [vmem:[%s565_s5 + $0x30] sm:$0xff]  ;;  %v379_v13 = vld [vmem:[%s565_s5 + $0x28] sm:$0xff] }
   0xb   :  { %76 = vmatpush.bf16.msra.mxu0 %v364_v2  ;;  %153 = vmatpush.bf16.msra.mxu1 %v372_v3  ;;  %v378_v14 = vld [vmem:[%s565_s5 + $0x20] sm:$0xff]  ;;  %v377_v15 = vld [vmem:[%s565_s5 + $0x18] sm:$0xff]  ;;  %v376_v22 = vld [vmem:[%s565_s5 + $0x10] sm:$0xff] }
   0xc   :  { %v386_v16 = vld [vmem:[%s562_s2] ss:$0 sm:$0xff]  ;;  %v375_v23 = vld [vmem:[%s565_s5 + $0x8] sm:$0xff] }
   0xd   :  { %v374_v24 = vld [vmem:[%s565_s5] sm:$0xff] }
   0xe   :  { %299 = vmatmul.msk.bf16.vlgmr.msra.gmra.mxu0 %vm65_vm0, %v44_v4  ;;  %236 = vmatpush.bf16.msra.mxu2 %v380_v12  ;;  %v387_v25 = vld [vmem:[%s564_s4] ss:$0 sm:$0xff]  ;;  %s450_s4 = smov [#allocation5]  }
   0xf   :  { %154 = vmatpush.bf16.msra.mxu1 %v371_v5  ;;  %v388_v31 = vld [vmem:[%s566_s6] ss:$0 sm:$0xff]  ;;  %s279_s5 = sshll.u32 %s450_s4, 4  ;;  %s280_s5 = int_to_ptr.vmem [resolvable:$true] %s279_s5 }
  0x12   :  { %237 = vmatpush.bf16.msra.mxu2 %v379_v13 }
  0x13   :  { %155 = vmatpush.bf16.msra.mxu1 %v370_v6 }
  0x16   :  { %238 = vmatpush.bf16.msra.mxu2 %v378_v14 }
  0x17   :  { %156 = vmatpush.bf16.msra.mxu1 %v369_v7 }
  0x1a   :  { %239 = vmatpush.bf16.msra.mxu2 %v377_v15 }
  0x1b   :  { %157 = vmatpush.bf16.msra.mxu1 %v368_v8 }
  0x1e   :  { %240 = vmatpush.bf16.msra.mxu2 %v376_v22 }
  0x1f   :  { %158 = vmatpush.bf16.msra.mxu1 %v367_v9 }
  0x22   :  { %241 = vmatpush.bf16.msra.mxu2 %v375_v23 }
  0x23   :  { %159 = vmatpush.bf16.msra.mxu1 %v366_v10 }
  0x26   :  { %242 = vmatpush.bf16.msra.mxu2 %v374_v24 }
  0x8b   :  { %v78_v17 = vpop.f32.mrf.mxu0 }
  0x8c   :  { %v79_v18 = vadd.f32 %v386_v16, %v78_v17 }
  0x8e   :  { %v82_v19 = vmax.f32 %v79_v18, 0.0 }
  0x90   :  { %v83_v20 = vpack.c.bf16 %v82_v19, %v82_v19 }
  0x92   :  { %160 = vmatmul.bf16.vlgmr.msra.gmra.mxu1 %v83_v20 }
  0x93   :  { %v80_v21 = vpop.f32.mrf.mxu0 }
 0x10f   :  { %v161_v26 = vpop.f32.mrf.mxu1 }
 0x110   :  { %v162_v27 = vadd.f32 %v387_v25, %v161_v26 }
 0x112   :  { %389 = vtanh.f32 %v162_v27 }
 0x117   :  { %v163_v28 = vpop.f32.mrf.mxu1 }
 0x118   :  { %v390_v29 = vpop.eup %389 }
 0x119   :  { %v166_v30 = vpack.c.bf16 %v390_v29, %v390_v29 }
 0x11b   :  { %243 = vmatmul.bf16.vlgmr.msra.gmra.mxu2 %v166_v30 }
 0x19e   :  { %v244_v32 = vpop.f32.mrf.mxu2 }
 0x19f   :  { %v245_v33 = vadd.f32 %v388_v31, %v244_v32 }
 0x1a1   :  { %v249_v34 = vsel %vm248_vm1, %v245_v33, -inf }
 0x1a2   :  { %250 = vmax.xlane.f32.xlu0 %v249_v34 }
 0x1a6   :  { %v246_v35 = vpop.f32.mrf.mxu2 }
 0x215   :  { %v251_v36 = vpop.xlane.xlu0 %250 }
 0x216   :  { %v252_v37 = vsub.f32 %v245_v33, %v251_v36 }
 0x218   :  { %v253_v38 = vmul.f32 1.442695, %v252_v37 }
 0x21a   :  { %391 = vpow2.f32 %v253_v38 }
 0x220   :  { %v392_v39 = vpop.eup %391 }
 0x221   :  { %v255_v40 = vsel %vm248_vm1, %v392_v39, 0.0 }
 0x222   :  { %256 = vadd.xlane.f32.xlu0 %v255_v40 }
 0x295   :  { %v257_v41 = vpop.xlane.xlu0 %256 }
 0x296   :  { %393 = vrcp.f32 %v257_v41  ;;  %v269_v45 = vand.u32 2147483648, %v257_v41  ;;  %v267_v47 = vand.u32 2147483647, %v257_v41  ;;  %vm263_vm3 = vweird.f32 %v257_v41 }
 0x298   :  { %v270_v49 = vor.u32 1.1754944e-38, %v269_v45  ;;  %vm268_vm5 = vcmp.eq.f32.partialorder %v267_v47, 8.507059e+37 }
 0x29c   :  { %v394_v42 = vpop.eup %393 }
 0x29d   :  { %v259_v43 = vmul.f32 %v394_v42, %v257_v41  ;;  %vm264_vm2 = vweird.f32 %v394_v42 }
 0x29e   :  { %vm265_vm4 = vmor %vm263_vm3, %vm264_vm2 }
 0x29f   :  { %v260_v44 = vsub.f32 1.0, %v259_v43 }
 0x2a1   :  { %v261_v46 = vmul.f32 %v394_v42, %v260_v44 }
 0x2a3   :  { %v262_v48 = vadd.f32 %v394_v42, %v261_v46 }
 0x2a5   :  { %v266_v50 = vsel %vm265_vm4, %v394_v42, %v262_v48 }
 0x2a6   :  { %v271_v51 = vsel %vm268_vm5, %v270_v49, %v266_v50 }
 0x2a7   :  { %v272_v52 = vmul.f32 %v392_v39, %v271_v51 }
 0x2a9   :  { %273 = vst.msk [vmem:[#allocation5] sm:$0xff] %vm248_vm1, %v272_v52 }
 0x2aa   :  { %284 = dma.vmem_to_hbm [thread:$0]  %s280_s5, 128, %s282_s20, [#allocation4]  }
 0x2ab   :  { %445 = dma.done.wait [#allocation4], 128  }
 0x2ac   :  { %446 = vsyncadd [#allocation4], 4294967168 }
 0x2ad   :  { %289 = vsyncpa [#allocation3], 1 }
 0x2ae   :  { %290 = vsyncpa [#allocation4], 1 }

</bundles_post_ra>
